<compile_context>
chip_gen: v6e
topology: v6e:2x2x1
jax: 0.10.0
libtpu: 0.0.40
codegen_flags: <defaults>
</compile_context>

<pallas_src>
import functools

import jax
import jax.numpy as jnp
from jax.experimental import pallas as pl
from jax.experimental.pallas import tpu as pltpu

NEG_SLOPE = 0.01     # nn.LeakyReLU() default
LN_EPS = 1e-5        # nn.LayerNorm default eps
_TB_CAP = 1024       # rows per grid step (~1.5 MiB f32 input block at N*D=320)


def _leaky_relu(x):
    return jnp.where(x >= 0, x, NEG_SLOPE * x)


def _round_up(x, m):
    return ((x + m - 1) // m) * m


def _cdiv(a, b):
    return (a + b - 1) // b


def _tiling(B):
    """Pick (rows-per-step TB, grid size G, padded batch B_pad).

    * TB capped so double-buffered blocks stay well under the 32 MiB scoped
      VMEM default (and v7x's 64 MiB physical VMEM).
    * tiny batches -> one grid step (per-step overhead ~0.35 us, a 2nd step
      buys nothing on single-core v5e/v6e);
    * otherwise >= 2 steps so the ("parallel",) axis can split across the two
      v7x TensorCores.
    * no divisor constraint on B: the wrapper zero-pads the batch to G * TB.
    """
    b8 = _round_up(max(B, 1), 8)
    if b8 <= 16:
        tb = b8
    elif b8 <= 2 * _TB_CAP:
        tb = _round_up(_cdiv(b8, 2), 8)
    else:
        tb = _TB_CAP
    g = _cdiv(b8, tb)
    return tb, g, g * tb


def _att3_1_kernel(x_ref, a_ref, baug_ref, w2_ref, g_ref, be_ref, o_ref, *, D, M):
    # x_ref:    (TB, N*D)       lane-dense rows: [uid | iid | attr_1 .. attr_M]
    # a_ref:    (M*D, M*D+2M)   block-diag W_t^T + folded w1 / column-sum cols
    # baug_ref: (1, M*D+2M)     matching augmented bias (att bias folded in)
    # w2_ref:   (1, D)          attention weight half acting on the item id
    # g_ref:    (1, D)          LayerNorm gamma
    # be_ref:   (1, D)          LayerNorm beta
    # o_ref:    (TB, OUT)       lane-padded output rows: [uid*iid | att | 0...]
    MD = M * D
    x = x_ref[...].astype(jnp.float32)               # (TB, N*D)
    TB = x.shape[0]

    u = x[:, 0:D]                                     # (TB, D) user-id emb
    iid = x[:, D:2 * D]                               # (TB, D) item-id emb
    attrs = x[:, 2 * D:2 * D + MD]                    # (TB, M*D) attributes

    # ua[:, j*D:(j+1)*D] = u * attr_j   (VPU; no (TB, M, D) 3-D intermediate)
    u_rep = jnp.concatenate([u] * M, axis=-1)         # (TB, M*D)
    ua = u_rep * attrs                                # (TB, M*D)

    # One MXU matmul per step against the augmented block-diagonal weight:
    #   cols [0, MD)        -> t_j = ua_j @ W_t^T + b_t      (trans Linear)
    #   cols [MD, MD+M)     -> t_j . w1 + b_t.w1 + b_a       (attention, half 1)
    #   cols [MD+M, MD+2M)  -> sum_d t_j[d]                  (LayerNorm mean*D)
    mm = jnp.dot(ua, a_ref[...], preferred_element_type=jnp.float32)
    mm = mm + baug_ref[...]
    t_flat = mm[:, :MD]                               # (TB, M*D)
    s1 = mm[:, MD:MD + M]                             # (TB, M)
    mu = mm[:, MD + M:MD + 2 * M] * (1.0 / D)         # (TB, M)

    # attention scores and softmax over the M messages (exact division)
    s2 = jnp.sum(iid * w2_ref[...], axis=-1, keepdims=True)      # (TB, 1)
    e = _leaky_relu(s1 + s2)
    e = e - jnp.max(e, axis=-1, keepdims=True)
    p = jnp.exp(e)
    alphas = p / jnp.sum(p, axis=-1, keepdims=True)               # (TB, M)

    # LayerNorm folded out of the M-reduction (never materialise LN(t)):
    #   att = gamma * (sum_j c_j * t_j - sum_j c_j * mu_j) + beta,
    #   with c_j = alpha_j * rstd_j and sum_j alpha_j == 1.
    t_blocks = [t_flat[:, j * D:(j + 1) * D] for j in range(M)]   # M x (TB, D)
    sq = jnp.concatenate(
        [jnp.sum(tj * tj, axis=-1, keepdims=True) for tj in t_blocks], axis=-1)
    var = sq * (1.0 / D) - mu * mu
    rstd = jax.lax.rsqrt(var + LN_EPS)
    c = alphas * rstd                                  # (TB, M)
    s0 = jnp.sum(c * mu, axis=-1, keepdims=True)       # (TB, 1)

    att_core = c[:, 0:1] * t_blocks[0]
    for j in range(1, M):                              # M small; unrolled VPU
        att_core = att_core + c[:, j:j + 1] * t_blocks[j]
    att = (att_core - s0) * g_ref[...] + be_ref[...]   # (TB, D)

    ui = u * iid                                       # (TB, D) uid*iid row

    # em_out = LeakyReLU(cat([ui, att], dim=-2)); eval-mode Dropout = identity.
    # TODO(synk): training-mode nn.Dropout (stochastic masking) not implemented.
    out = _leaky_relu(jnp.concatenate([ui, att], axis=-1))        # (TB, 2*D)
    pad_lanes = o_ref.shape[-1] - out.shape[-1]
    if pad_lanes:                                      # lane-pad -> unmasked vst
        out = jnp.concatenate(
            [out, jnp.zeros((TB, pad_lanes), out.dtype)], axis=-1)
    o_ref[...] = out.astype(o_ref.dtype)


def att3_1_forward(embeddings, w_trans, b_trans, att_w, att_b, ln_gamma, ln_beta):
    """att3_1 forward (eval mode).

    embeddings: (B, N, D)  node rows: [uid, iid, attr_1 .. attr_{N-2}]
    w_trans:    (D, D)     trans nn.Linear weight (torch layout: y = x @ W^T + b)
    b_trans:    (D,)       trans bias
    att_w:      (1, 2*D)   attention weight over concat([t, iid])
    att_b:      (1,)       attention bias
    ln_gamma, ln_beta: (D,)
    returns:    (B, 2, D)
    """
    B, N, D = embeddings.shape
    assert N >= 3, "need uid, iid and at least one attribute node"
    M = N - 2
    MD = M * D
    ND = N * D
    f32 = jnp.float32

    Wt = w_trans.astype(f32).T                        # (D, D): t = ua @ Wt + b
    bt = b_trans.astype(f32)
    w1 = att_w[0, :D].astype(f32)                     # acts on the transformed ua
    w2 = att_w[0, D:].astype(f32).reshape(1, D)       # acts on the item id
    ab = att_b.astype(f32)[0]

    # Augmented block-diagonal weight / bias (built once, tiny).
    eye_m = jnp.eye(M, dtype=f32)
    a_aug = jnp.concatenate([
        jnp.kron(eye_m, Wt),                           # -> t_j
        jnp.kron(eye_m, (Wt @ w1)[:, None]),           # -> t_j . w1 (bias below)
        jnp.kron(eye_m, jnp.sum(Wt, axis=1)[:, None]), # -> sum_d t_j[d]
    ], axis=1)                                         # (MD, MD + 2M)
    b_aug = jnp.concatenate([
        jnp.tile(bt, M),
        jnp.full((M,), jnp.dot(bt, w1) + ab, dtype=f32),
        jnp.full((M,), jnp.sum(bt), dtype=f32),
    ]).reshape(1, MD + 2 * M)

    gamma = ln_gamma.astype(f32).reshape(1, D)
    beta = ln_beta.astype(f32).reshape(1, D)

    TB, G, B_pad = _tiling(B)
    out_lanes = max(128, _round_up(2 * D, 128))

    # Lane-dense input rows: (B, N, D) -> (B, N*D).  Pad the batch (not a
    # divisor constraint) so the grid covers it exactly; pad rows are zeros and
    # sliced off below.
    x_flat = embeddings.reshape(B, ND)
    if B_pad != B:
        x_flat = jnp.pad(x_flat, ((0, B_pad - B), (0, 0)))

    kernel = functools.partial(_att3_1_kernel, D=D, M=M)
    const = lambda b: (0, 0)   # constant block index -> fetched once by pipeline

    out = pl.pallas_call(
        kernel,
        out_shape=jax.ShapeDtypeStruct((B_pad, out_lanes), embeddings.dtype),
        grid_spec=pltpu.PrefetchScalarGridSpec(
            num_scalar_prefetch=0,
            grid=(G,),
            in_specs=[
                pl.BlockSpec((TB, ND), lambda b: (b, 0)),
                pl.BlockSpec(a_aug.shape, const),
                pl.BlockSpec(b_aug.shape, const),
                pl.BlockSpec(w2.shape, const),
                pl.BlockSpec(gamma.shape, const),
                pl.BlockSpec(beta.shape, const),
            ],
            out_specs=pl.BlockSpec((TB, out_lanes), lambda b: (b, 0)),
        ),
        compiler_params=pltpu.CompilerParams(
            dimension_semantics=("parallel",),
            vmem_limit_bytes=32 * 1024 * 1024,
        ),
    )(x_flat, a_aug, b_aug, w2, gamma, beta)

    # (B_pad, out_lanes) -> (B, 2, D); batch/lane padding sliced off.
    return out[:B, :2 * D].reshape(B, 2, D)


def _reference(embeddings, w_trans, b_trans, att_w, att_b, ln_gamma, ln_beta):
    """Pure-JAX reference of the same forward for the correctness check."""
    B, N, D = embeddings.shape
    u = embeddings[:, 0, :]
    iid = embeddings[:, 1, :]
    attrs = embeddings[:, 2:, :]

    ua = u[:, None, :] * attrs                                  # (B, M, D)
    t = ua @ w_trans.T + b_trans                                # trans Linear
    w1 = att_w[0, :D]
    w2 = att_w[0, D:]
    e = _leaky_relu(jnp.einsum("bmd,d->bm", t, w1)
                    + (iid @ w2)[:, None] + att_b[0])           # (B, M)
    alphas = jax.nn.softmax(e, axis=-1)

    mu = t.mean(-1, keepdims=True)
    var = ((t - mu) ** 2).mean(-1, keepdims=True)
    v = (t - mu) / jnp.sqrt(var + LN_EPS) * ln_gamma + ln_beta

    att = jnp.einsum("bm,bmd->bd", alphas, v)                   # (B, D)
    ui = u * iid
    out = jnp.concatenate([ui[:, None, :], att[:, None, :]], axis=-2)
    return _leaky_relu(out)                                     # (B, 2, D)


if __name__ == "__main__":
    def _run_case(key, B, N, D):
        ks = jax.random.split(key, 7)
        embeddings = jax.random.normal(ks[0], (B, N, D), dtype=jnp.float32)
        w_trans = jax.random.normal(ks[1], (D, D), dtype=jnp.float32) * 0.1
        b_trans = jax.random.normal(ks[2], (D,), dtype=jnp.float32) * 0.1
        att_w = jax.random.normal(ks[3], (1, 2 * D), dtype=jnp.float32) * 0.1
        att_b = jax.random.normal(ks[4], (1,), dtype=jnp.float32) * 0.1
        ln_gamma = 1.0 + 0.1 * jax.random.normal(ks[5], (D,), dtype=jnp.float32)
        ln_beta = 0.1 * jax.random.normal(ks[6], (D,), dtype=jnp.float32)

        out = att3_1_forward(embeddings, w_trans, b_trans, att_w, att_b,
                             ln_gamma, ln_beta)
        out = jax.block_until_ready(out)
        ref = _reference(embeddings, w_trans, b_trans, att_w, att_b,
                         ln_gamma, ln_beta)
        assert out.shape == (B, 2, D), out.shape
        max_err = float(jnp.max(jnp.abs(out - ref)))
        assert jnp.allclose(out, ref, atol=1e-4, rtol=1e-4), (
            f"mismatch B={B} N={N} D={D}, max_err={max_err}")

    root = jax.random.PRNGKey(0)
    k1, k2 = jax.random.split(root)
    _run_case(k1, B=8, N=10, D=32)   # tiny batch -> single grid step
    _run_case(k2, B=37, N=7, D=32)   # non-divisible batch -> padded, 2 steps
    print("KERNEL_OK")
</pallas_src>

<mosaic_0001>
module attributes {stable_mosaic.version = 11 : i64} {
  func.func @_att3_1_kernel(%arg0: i32, %arg1: memref<8x320xf32, #tpu.memory_space<vmem>>, %arg2: memref<256x272xf32, #tpu.memory_space<vmem>>, %arg3: memref<1x272xf32, #tpu.memory_space<vmem>>, %arg4: memref<1x32xf32, #tpu.memory_space<vmem>>, %arg5: memref<1x32xf32, #tpu.memory_space<vmem>>, %arg6: memref<1x32xf32, #tpu.memory_space<vmem>>, %arg7: memref<8x128xf32, #tpu.memory_space<vmem>>) attributes {dimension_semantics = [#tpu.dimension_semantics<parallel>], iteration_bounds = array<i64: 1>, scalar_prefetch = 0 : i64, scratch_operands = 0 : i64, tpu.core_type = #tpu.core_type<tc>, window_params = [{transform_indices = @transform_0, window_bounds = array<i64: 8, 320>}, {pipeline_mode = #tpu.pipeline_mode<synchronous>, transform_indices = @transform_1, window_bounds = array<i64: 256, 272>}, {pipeline_mode = #tpu.pipeline_mode<synchronous>, transform_indices = @transform_2, window_bounds = array<i64: 1, 272>}, {pipeline_mode = #tpu.pipeline_mode<synchronous>, transform_indices = @transform_3, window_bounds = array<i64: 1, 32>}, {pipeline_mode = #tpu.pipeline_mode<synchronous>, transform_indices = @transform_4, window_bounds = array<i64: 1, 32>}, {pipeline_mode = #tpu.pipeline_mode<synchronous>, transform_indices = @transform_5, window_bounds = array<i64: 1, 32>}, {transform_indices = @transform_6, window_bounds = array<i64: 8, 128>}]} {
    %c0 = arith.constant 0 : index
    %c0_0 = arith.constant 0 : index
    %0 = vector.load %arg1[%c0, %c0_0] : memref<8x320xf32, #tpu.memory_space<vmem>>, vector<8x320xf32>
    %1 = vector.extract_strided_slice %0 {offsets = [0, 0], sizes = [8, 32], strides = [1, 1]} : vector<8x320xf32> to vector<8x32xf32>
    %2 = vector.extract_strided_slice %0 {offsets = [0, 32], sizes = [8, 32], strides = [1, 1]} : vector<8x320xf32> to vector<8x32xf32>
    %3 = vector.extract_strided_slice %0 {offsets = [0, 64], sizes = [8, 256], strides = [1, 1]} : vector<8x320xf32> to vector<8x256xf32>
    %4 = tpu.concatenate %1, %1, %1, %1, %1, %1, %1, %1 in 1 : vector<8x32xf32>, vector<8x32xf32>, vector<8x32xf32>, vector<8x32xf32>, vector<8x32xf32>, vector<8x32xf32>, vector<8x32xf32>, vector<8x32xf32> -> vector<8x256xf32>
    %5 = arith.mulf %4, %3 : vector<8x256xf32>
    %c0_1 = arith.constant 0 : index
    %c0_2 = arith.constant 0 : index
    %6 = vector.load %arg2[%c0_1, %c0_2] : memref<256x272xf32, #tpu.memory_space<vmem>>, vector<256x272xf32>
    %cst = arith.constant dense<0.000000e+00> : vector<8x272xf32>
    %7 = tpu.matmul %5, %6, %cst {dimension_numbers = #tpu.dot_dimension_numbers<[1], [0], [0], [1], [0, 0, 1, 1], [], []>} : vector<8x256xf32>, vector<256x272xf32>, vector<8x272xf32> -> vector<8x272xf32>
    %c0_3 = arith.constant 0 : index
    %c0_4 = arith.constant 0 : index
    %8 = vector.load %arg3[%c0_3, %c0_4] : memref<1x272xf32, #tpu.memory_space<vmem>>, vector<1x272xf32>
    %9 = vector.broadcast %8 : vector<1x272xf32> to vector<8x272xf32>
    %10 = arith.addf %7, %9 : vector<8x272xf32>
    %11 = vector.extract_strided_slice %10 {offsets = [0, 0], sizes = [8, 256], strides = [1, 1]} : vector<8x272xf32> to vector<8x256xf32>
    %12 = vector.extract_strided_slice %10 {offsets = [0, 256], sizes = [8, 8], strides = [1, 1]} : vector<8x272xf32> to vector<8x8xf32>
    %13 = vector.extract_strided_slice %10 {offsets = [0, 264], sizes = [8, 8], strides = [1, 1]} : vector<8x272xf32> to vector<8x8xf32>
    %cst_5 = arith.constant 3.125000e-02 : f32
    %14 = vector.broadcast %cst_5 : f32 to vector<8x8xf32>
    %15 = arith.mulf %13, %14 : vector<8x8xf32>
    %c0_6 = arith.constant 0 : index
    %c0_7 = arith.constant 0 : index
    %16 = vector.load %arg4[%c0_6, %c0_7] : memref<1x32xf32, #tpu.memory_space<vmem>>, vector<1x32xf32>
    %17 = vector.broadcast %16 : vector<1x32xf32> to vector<8x32xf32>
    %18 = arith.mulf %2, %17 : vector<8x32xf32>
    %cst_8 = arith.constant dense<0.000000e+00> : vector<8xf32>
    %19 = vector.multi_reduction <add>, %18, %cst_8 [1] : vector<8x32xf32> to vector<8xf32>
    %20 = vector.shape_cast %19 : vector<8xf32> to vector<8x1xf32>
    %21 = vector.broadcast %20 : vector<8x1xf32> to vector<8x8xf32>
    %22 = arith.addf %12, %21 : vector<8x8xf32>
    %cst_9 = arith.constant 0.000000e+00 : f32
    %23 = vector.broadcast %cst_9 : f32 to vector<8x8xf32>
    %24 = arith.cmpf oge, %22, %23 : vector<8x8xf32>
    %cst_10 = arith.constant 0.00999999977 : f32
    %25 = vector.broadcast %cst_10 : f32 to vector<8x8xf32>
    %26 = arith.mulf %25, %22 : vector<8x8xf32>
    %27 = arith.select %24, %22, %26 : vector<8x8xi1>, vector<8x8xf32>
    %cst_11 = arith.constant dense<0xFF800000> : vector<8xf32>
    %28 = vector.multi_reduction <maximumf>, %27, %cst_11 [1] : vector<8x8xf32> to vector<8xf32>
    %29 = vector.shape_cast %28 : vector<8xf32> to vector<8x1xf32>
    %30 = vector.broadcast %29 : vector<8x1xf32> to vector<8x8xf32>
    %31 = arith.subf %27, %30 : vector<8x8xf32>
    %32 = math.exp %31 : vector<8x8xf32>
    %cst_12 = arith.constant dense<0.000000e+00> : vector<8xf32>
    %33 = vector.multi_reduction <add>, %32, %cst_12 [1] : vector<8x8xf32> to vector<8xf32>
    %34 = vector.shape_cast %33 : vector<8xf32> to vector<8x1xf32>
    %35 = vector.broadcast %34 : vector<8x1xf32> to vector<8x8xf32>
    %36 = arith.divf %32, %35 : vector<8x8xf32>
    %37 = vector.extract_strided_slice %11 {offsets = [0, 0], sizes = [8, 32], strides = [1, 1]} : vector<8x256xf32> to vector<8x32xf32>
    %38 = vector.extract_strided_slice %11 {offsets = [0, 32], sizes = [8, 32], strides = [1, 1]} : vector<8x256xf32> to vector<8x32xf32>
    %39 = vector.extract_strided_slice %11 {offsets = [0, 64], sizes = [8, 32], strides = [1, 1]} : vector<8x256xf32> to vector<8x32xf32>
    %40 = vector.extract_strided_slice %11 {offsets = [0, 96], sizes = [8, 32], strides = [1, 1]} : vector<8x256xf32> to vector<8x32xf32>
    %41 = vector.extract_strided_slice %11 {offsets = [0, 128], sizes = [8, 32], strides = [1, 1]} : vector<8x256xf32> to vector<8x32xf32>
    %42 = vector.extract_strided_slice %11 {offsets = [0, 160], sizes = [8, 32], strides = [1, 1]} : vector<8x256xf32> to vector<8x32xf32>
    %43 = vector.extract_strided_slice %11 {offsets = [0, 192], sizes = [8, 32], strides = [1, 1]} : vector<8x256xf32> to vector<8x32xf32>
    %44 = vector.extract_strided_slice %11 {offsets = [0, 224], sizes = [8, 32], strides = [1, 1]} : vector<8x256xf32> to vector<8x32xf32>
    %45 = arith.mulf %37, %37 : vector<8x32xf32>
    %cst_13 = arith.constant dense<0.000000e+00> : vector<8xf32>
    %46 = vector.multi_reduction <add>, %45, %cst_13 [1] : vector<8x32xf32> to vector<8xf32>
    %47 = vector.shape_cast %46 : vector<8xf32> to vector<8x1xf32>
    %48 = arith.mulf %38, %38 : vector<8x32xf32>
    %cst_14 = arith.constant dense<0.000000e+00> : vector<8xf32>
    %49 = vector.multi_reduction <add>, %48, %cst_14 [1] : vector<8x32xf32> to vector<8xf32>
    %50 = vector.shape_cast %49 : vector<8xf32> to vector<8x1xf32>
    %51 = arith.mulf %39, %39 : vector<8x32xf32>
    %cst_15 = arith.constant dense<0.000000e+00> : vector<8xf32>
    %52 = vector.multi_reduction <add>, %51, %cst_15 [1] : vector<8x32xf32> to vector<8xf32>
    %53 = vector.shape_cast %52 : vector<8xf32> to vector<8x1xf32>
    %54 = arith.mulf %40, %40 : vector<8x32xf32>
    %cst_16 = arith.constant dense<0.000000e+00> : vector<8xf32>
    %55 = vector.multi_reduction <add>, %54, %cst_16 [1] : vector<8x32xf32> to vector<8xf32>
    %56 = vector.shape_cast %55 : vector<8xf32> to vector<8x1xf32>
    %57 = arith.mulf %41, %41 : vector<8x32xf32>
    %cst_17 = arith.constant dense<0.000000e+00> : vector<8xf32>
    %58 = vector.multi_reduction <add>, %57, %cst_17 [1] : vector<8x32xf32> to vector<8xf32>
    %59 = vector.shape_cast %58 : vector<8xf32> to vector<8x1xf32>
    %60 = arith.mulf %42, %42 : vector<8x32xf32>
    %cst_18 = arith.constant dense<0.000000e+00> : vector<8xf32>
    %61 = vector.multi_reduction <add>, %60, %cst_18 [1] : vector<8x32xf32> to vector<8xf32>
    %62 = vector.shape_cast %61 : vector<8xf32> to vector<8x1xf32>
    %63 = arith.mulf %43, %43 : vector<8x32xf32>
    %cst_19 = arith.constant dense<0.000000e+00> : vector<8xf32>
    %64 = vector.multi_reduction <add>, %63, %cst_19 [1] : vector<8x32xf32> to vector<8xf32>
    %65 = vector.shape_cast %64 : vector<8xf32> to vector<8x1xf32>
    %66 = arith.mulf %44, %44 : vector<8x32xf32>
    %cst_20 = arith.constant dense<0.000000e+00> : vector<8xf32>
    %67 = vector.multi_reduction <add>, %66, %cst_20 [1] : vector<8x32xf32> to vector<8xf32>
    %68 = vector.shape_cast %67 : vector<8xf32> to vector<8x1xf32>
    %69 = tpu.concatenate %47, %50, %53, %56, %59, %62, %65, %68 in 1 : vector<8x1xf32>, vector<8x1xf32>, vector<8x1xf32>, vector<8x1xf32>, vector<8x1xf32>, vector<8x1xf32>, vector<8x1xf32>, vector<8x1xf32> -> vector<8x8xf32>
    %cst_21 = arith.constant 3.125000e-02 : f32
    %70 = vector.broadcast %cst_21 : f32 to vector<8x8xf32>
    %71 = arith.mulf %69, %70 : vector<8x8xf32>
    %72 = arith.mulf %15, %15 : vector<8x8xf32>
    %73 = arith.subf %71, %72 : vector<8x8xf32>
    %cst_22 = arith.constant 9.99999974E-6 : f32
    %74 = vector.broadcast %cst_22 : f32 to vector<8x8xf32>
    %75 = arith.addf %73, %74 : vector<8x8xf32>
    %76 = math.rsqrt %75 : vector<8x8xf32>
    %77 = arith.mulf %36, %76 : vector<8x8xf32>
    %78 = arith.mulf %77, %15 : vector<8x8xf32>
    %cst_23 = arith.constant dense<0.000000e+00> : vector<8xf32>
    %79 = vector.multi_reduction <add>, %78, %cst_23 [1] : vector<8x8xf32> to vector<8xf32>
    %80 = vector.shape_cast %79 : vector<8xf32> to vector<8x1xf32>
    %81 = vector.extract_strided_slice %77 {offsets = [0, 0], sizes = [8, 1], strides = [1, 1]} : vector<8x8xf32> to vector<8x1xf32>
    %82 = vector.broadcast %81 : vector<8x1xf32> to vector<8x32xf32>
    %83 = arith.mulf %82, %37 : vector<8x32xf32>
    %84 = vector.extract_strided_slice %77 {offsets = [0, 1], sizes = [8, 1], strides = [1, 1]} : vector<8x8xf32> to vector<8x1xf32>
    %85 = vector.broadcast %84 : vector<8x1xf32> to vector<8x32xf32>
    %86 = arith.mulf %85, %38 : vector<8x32xf32>
    %87 = arith.addf %83, %86 : vector<8x32xf32>
    %88 = vector.extract_strided_slice %77 {offsets = [0, 2], sizes = [8, 1], strides = [1, 1]} : vector<8x8xf32> to vector<8x1xf32>
    %89 = vector.broadcast %88 : vector<8x1xf32> to vector<8x32xf32>
    %90 = arith.mulf %89, %39 : vector<8x32xf32>
    %91 = arith.addf %87, %90 : vector<8x32xf32>
    %92 = vector.extract_strided_slice %77 {offsets = [0, 3], sizes = [8, 1], strides = [1, 1]} : vector<8x8xf32> to vector<8x1xf32>
    %93 = vector.broadcast %92 : vector<8x1xf32> to vector<8x32xf32>
    %94 = arith.mulf %93, %40 : vector<8x32xf32>
    %95 = arith.addf %91, %94 : vector<8x32xf32>
    %96 = vector.extract_strided_slice %77 {offsets = [0, 4], sizes = [8, 1], strides = [1, 1]} : vector<8x8xf32> to vector<8x1xf32>
    %97 = vector.broadcast %96 : vector<8x1xf32> to vector<8x32xf32>
    %98 = arith.mulf %97, %41 : vector<8x32xf32>
    %99 = arith.addf %95, %98 : vector<8x32xf32>
    %100 = vector.extract_strided_slice %77 {offsets = [0, 5], sizes = [8, 1], strides = [1, 1]} : vector<8x8xf32> to vector<8x1xf32>
    %101 = vector.broadcast %100 : vector<8x1xf32> to vector<8x32xf32>
    %102 = arith.mulf %101, %42 : vector<8x32xf32>
    %103 = arith.addf %99, %102 : vector<8x32xf32>
    %104 = vector.extract_strided_slice %77 {offsets = [0, 6], sizes = [8, 1], strides = [1, 1]} : vector<8x8xf32> to vector<8x1xf32>
    %105 = vector.broadcast %104 : vector<8x1xf32> to vector<8x32xf32>
    %106 = arith.mulf %105, %43 : vector<8x32xf32>
    %107 = arith.addf %103, %106 : vector<8x32xf32>
    %108 = vector.extract_strided_slice %77 {offsets = [0, 7], sizes = [8, 1], strides = [1, 1]} : vector<8x8xf32> to vector<8x1xf32>
    %109 = vector.broadcast %108 : vector<8x1xf32> to vector<8x32xf32>
    %110 = arith.mulf %109, %44 : vector<8x32xf32>
    %111 = arith.addf %107, %110 : vector<8x32xf32>
    %112 = vector.broadcast %80 : vector<8x1xf32> to vector<8x32xf32>
    %113 = arith.subf %111, %112 : vector<8x32xf32>
    %c0_24 = arith.constant 0 : index
    %c0_25 = arith.constant 0 : index
    %114 = vector.load %arg5[%c0_24, %c0_25] : memref<1x32xf32, #tpu.memory_space<vmem>>, vector<1x32xf32>
    %115 = vector.broadcast %114 : vector<1x32xf32> to vector<8x32xf32>
    %116 = arith.mulf %113, %115 : vector<8x32xf32>
    %c0_26 = arith.constant 0 : index
    %c0_27 = arith.constant 0 : index
    %117 = vector.load %arg6[%c0_26, %c0_27] : memref<1x32xf32, #tpu.memory_space<vmem>>, vector<1x32xf32>
    %118 = vector.broadcast %117 : vector<1x32xf32> to vector<8x32xf32>
    %119 = arith.addf %116, %118 : vector<8x32xf32>
    %120 = arith.mulf %1, %2 : vector<8x32xf32>
    %121 = tpu.concatenate %120, %119 in 1 : vector<8x32xf32>, vector<8x32xf32> -> vector<8x64xf32>
    %cst_28 = arith.constant 0.000000e+00 : f32
    %122 = vector.broadcast %cst_28 : f32 to vector<8x64xf32>
    %123 = arith.cmpf oge, %121, %122 : vector<8x64xf32>
    %cst_29 = arith.constant 0.00999999977 : f32
    %124 = vector.broadcast %cst_29 : f32 to vector<8x64xf32>
    %125 = arith.mulf %124, %121 : vector<8x64xf32>
    %126 = arith.select %123, %121, %125 : vector<8x64xi1>, vector<8x64xf32>
    %cst_30 = arith.constant 0.000000e+00 : f32
    %127 = vector.broadcast %cst_30 : f32 to vector<8x64xf32>
    %128 = tpu.concatenate %126, %127 in 1 : vector<8x64xf32>, vector<8x64xf32> -> vector<8x128xf32>
    %c0_31 = arith.constant 0 : index
    %c0_32 = arith.constant 0 : index
    %129 = vector.load %arg7[%c0_31, %c0_32] : memref<8x128xf32, #tpu.memory_space<vmem>>, vector<8x128xf32>
    tpu.vector_store %arg7[%c0_31, %c0_32], %128 {strides = array<i32>} : memref<8x128xf32, #tpu.memory_space<vmem>>, vector<8x128xf32>,
    return
  }
  func.func @transform_0(%arg0: i32) -> (i32, i32) {
    %c0_i32 = arith.constant 0 : i32
    %c0_i32_0 = arith.constant 0 : i32
    return %arg0, %c0_i32 : i32, i32
  }
  func.func @transform_1(%arg0: i32) -> (i32, i32) {
    %c0_i32 = arith.constant 0 : i32
    %c0_i32_0 = arith.constant 0 : i32
    %c0_i32_1 = arith.constant 0 : i32
    return %c0_i32, %c0_i32_0 : i32, i32
  }
  func.func @transform_2(%arg0: i32) -> (i32, i32) {
    %c0_i32 = arith.constant 0 : i32
    %c0_i32_0 = arith.constant 0 : i32
    %c0_i32_1 = arith.constant 0 : i32
    return %c0_i32, %c0_i32_0 : i32, i32
  }
  func.func @transform_3(%arg0: i32) -> (i32, i32) {
    %c0_i32 = arith.constant 0 : i32
    %c0_i32_0 = arith.constant 0 : i32
    %c0_i32_1 = arith.constant 0 : i32
    return %c0_i32, %c0_i32_0 : i32, i32
  }
  func.func @transform_4(%arg0: i32) -> (i32, i32) {
    %c0_i32 = arith.constant 0 : i32
    %c0_i32_0 = arith.constant 0 : i32
    %c0_i32_1 = arith.constant 0 : i32
    return %c0_i32, %c0_i32_0 : i32, i32
  }
  func.func @transform_5(%arg0: i32) -> (i32, i32) {
    %c0_i32 = arith.constant 0 : i32
    %c0_i32_0 = arith.constant 0 : i32
    %c0_i32_1 = arith.constant 0 : i32
    return %c0_i32, %c0_i32_0 : i32, i32
  }
  func.func @transform_6(%arg0: i32) -> (i32, i32) {
    %c0_i32 = arith.constant 0 : i32
    %c0_i32_0 = arith.constant 0 : i32
    return %arg0, %c0_i32 : i32, i32
  }
}

</mosaic_0001>

<bundles_post_ra>
// kernel: tpu_custom_call.1
= control target key start
LH: loop header
LB: loop body
LE: loop exit
PB: predicated region body
PF: predicated region fallthrough
CT: control target
= control target key end

     0   :  { %s623_s23 = smov 96   ;;  %s624_s24 = smov 32   ;;  %s1049_s0 = inlined_call_operand.vmem [shape: f32[8,320], index: 0, kind: input, shape index: {}]   ;;  %s1050_s1 = inlined_call_operand.vmem [shape: f32[256,272], index: 1, kind: input, shape index: {}]   ;;  %s1051_s2 = inlined_call_operand.vmem [shape: f32[1,272], index: 2, kind: input, shape index: {}]   ;;  %s1052_s3 = inlined_call_operand.vmem [shape: f32[1,32], index: 3, kind: input, shape index: {}]   ;;  %s1053_s4 = inlined_call_operand.vmem [shape: f32[1,32], index: 4, kind: input, shape index: {}]   ;;  %s1054_s5 = inlined_call_operand.vmem [shape: f32[1,32], index: 5, kind: input, shape index: {}]   ;;  %s1055_s6 = inlined_call_operand.hbm [shape: f32[8,128], index: 6, kind: output, shape index: {}]  }
   0x1   :  { %v674_v0 = vld [vmem:[%s1049_s0] sm:$0xff]  ;;  %v101_v1 = vld [vmem:[%s1050_s1 + $0x170] sm:$0xff]  ;;  %v25_v2 = vld [vmem:[%s1049_s0 + $0x8] sm:$0xff]  ;;  %s625_s13 = smov 64  }
   0x2   :  { %34 = vrot.lane.b32.xlu1 %v674_v0, %s623_s23  ;;  %28 = vrot.lane.b32.xlu0 %v674_v0, %s624_s24  ;;  %v100_v3 = vld [vmem:[%s1050_s1 + $0x168] sm:$0xff]  ;;  %v98_v4 = vld [vmem:[%s1050_s1 + $0x158] sm:$0xff] }
   0x3   :  { %168 = vmatprep.subr.mxu0 %v101_v1  ;;  %v97_v5 = vld [vmem:[%s1050_s1 + $0x150] sm:$0xff]  ;;  %v95_v6 = vld [vmem:[%s1050_s1 + $0x140] sm:$0xff]  ;;  %v94_v7 = vld [vmem:[%s1050_s1 + $0x138] sm:$0xff] }
   0x4   :  { %169 = vmatpush1.msra.mxu0 %v100_v3  ;;  %v535_v8 = vld [vmem:[%s1052_s3] ss:$0 sm:$0xff]  ;;  %v26_v9 = vld [vmem:[%s1049_s0 + $0x10] sm:$0xff]  ;;  %v92_v10 = vld [vmem:[%s1050_s1 + $0x128] sm:$0xff] }
   0x5   :  { %170 = vmatprep.subr.mxu0 %v98_v4  ;;  %v91_v11 = vld [vmem:[%s1050_s1 + $0x120] sm:$0xff]  ;;  %v89_v12 = vld [vmem:[%s1050_s1 + $0x110] sm:$0xff]  ;;  %v88_v13 = vld [vmem:[%s1050_s1 + $0x108] sm:$0xff] }
   0x6   :  { %45 = vrot.lane.b32.xlu1 %v25_v2, %s625_s13  ;;  %31 = vrot.lane.b32.xlu0 %v674_v0, %s625_s13  ;;  %v86_v14 = vld [vmem:[%s1050_s1 + $0xf8] sm:$0xff]  ;;  %v85_v15 = vld [vmem:[%s1050_s1 + $0xf0] sm:$0xff] }
   0x7   :  { %171 = vmatpush1.msra.mxu0 %v97_v5  ;;  %v83_v16 = vld [vmem:[%s1050_s1 + $0xe0] sm:$0xff]  ;;  %v150_v17 = vld [vmem:[%s1050_s1 + $0x2f8] sm:$0xff]  ;;  %v80_v21 = vld [vmem:[%s1050_s1 + $0xc8] sm:$0xff] }
   0x8   :  { %172 = vmatprep.subr.mxu0 %v95_v6  ;;  %v82_v18 = vld [vmem:[%s1050_s1 + $0xd8] sm:$0xff]  ;;  %538 = vmatprep.subr.mxu1 %v150_v17  ;;  %v147_v20 = vld [vmem:[%s1050_s1 + $0x2e0] sm:$0xff]  ;;  %v144_v24 = vld [vmem:[%s1050_s1 + $0x2c8] sm:$0xff] }
   0x9   :  { %173 = vmatpush1.msra.mxu0 %v94_v7  ;;  %v102_v19 = vld [vmem:[%s1050_s1 + $0x178] sm:$0xff]  ;;  %v99_v22 = vld [vmem:[%s1050_s1 + $0x160] sm:$0xff]  ;;  %v96_v25 = vld [vmem:[%s1050_s1 + $0x148] sm:$0xff] }
   0xa   :  { %316 = vrot.lane.b32.xlu1 %v535_v8, %s624_s24  ;;  %47 = vrot.lane.b32.xlu0 %v26_v9, %s625_s13  ;;  %v79_v23 = vld [vmem:[%s1050_s1 + $0xc0] sm:$0xff]  ;;  %v77_v26 = vld [vmem:[%s1050_s1 + $0xb0] sm:$0xff] }
   0xb   :  { %174 = vmatprep.subr.mxu0 %v92_v10  ;;  %539 = vmatpush3.msra.mxu1 %v102_v19  ;;  %v141_v27 = vld [vmem:[%s1050_s1 + $0x2b0] sm:$0xff]  ;;  %v76_v28 = vld [vmem:[%s1050_s1 + $0xa8] sm:$0xff]  ;;  %v74_v30 = vld [vmem:[%s1050_s1 + $0x98] sm:$0xff] }
   0xc   :  { %175 = vmatpush1.msra.mxu0 %v91_v11  ;;  %540 = vmatprep.subr.mxu1 %v147_v20  ;;  %v93_v29 = vld [vmem:[%s1050_s1 + $0x130] sm:$0xff]  ;;  %v138_v31 = vld [vmem:[%s1050_s1 + $0x298] sm:$0xff]  ;;  %v71_v34 = vld [vmem:[%s1050_s1 + $0x80] sm:$0xff] }
   0xd   :  { %176 = vmatprep.subr.mxu0 %v89_v12  ;;  %541 = vmatpush3.msra.mxu1 %v99_v22  ;;  %v73_v32 = vld [vmem:[%s1050_s1 + $0x90] sm:$0xff]  ;;  %v90_v33 = vld [vmem:[%s1050_s1 + $0x118] sm:$0xff]  ;;  %v135_v35 = vld [vmem:[%s1050_s1 + $0x280] sm:$0xff] }
   0xe   :  { %177 = vmatpush1.msra.mxu0 %v88_v13  ;;  %542 = vmatprep.subr.mxu1 %v144_v24  ;;  %v70_v36 = vld [vmem:[%s1050_s1 + $0x78] sm:$0xff]  ;;  %v87_v37 = vld [vmem:[%s1050_s1 + $0x100] sm:$0xff]  ;;  %v68_v38 = vld [vmem:[%s1050_s1 + $0x68] sm:$0xff] }
   0xf   :  { %178 = vmatprep.subr.mxu0 %v86_v14  ;;  %543 = vmatpush3.msra.mxu1 %v96_v25  ;;  %v132_v39 = vld [vmem:[%s1050_s1 + $0x268] sm:$0xff]  ;;  %v67_v40 = vld [vmem:[%s1050_s1 + $0x60] sm:$0xff]  ;;  %v65_v42 = vld [vmem:[%s1050_s1 + $0x50] sm:$0xff] }
  0x10   :  { %179 = vmatpush1.msra.mxu0 %v85_v15  ;;  %544 = vmatprep.subr.mxu1 %v141_v27  ;;  %v84_v41 = vld [vmem:[%s1050_s1 + $0xe8] sm:$0xff]  ;;  %v129_v43 = vld [vmem:[%s1050_s1 + $0x250] sm:$0xff]  ;;  %v62_v46 = vld [vmem:[%s1050_s1 + $0x38] sm:$0xff] }
  0x11   :  { %180 = vmatprep.subr.mxu0 %v83_v16  ;;  %545 = vmatpush3.msra.mxu1 %v93_v29  ;;  %v64_v44 = vld [vmem:[%s1050_s1 + $0x48] sm:$0xff]  ;;  %v81_v45 = vld [vmem:[%s1050_s1 + $0xd0] sm:$0xff]  ;;  %v126_v47 = vld [vmem:[%s1050_s1 + $0x238] sm:$0xff] }
  0x12   :  { %181 = vmatpush1.msra.mxu0 %v82_v18  ;;  %546 = vmatprep.subr.mxu1 %v138_v31  ;;  %v61_v48 = vld [vmem:[%s1050_s1 + $0x30] sm:$0xff]  ;;  %v78_v49 = vld [vmem:[%s1050_s1 + $0xb8] sm:$0xff]  ;;  %v59_v50 = vld [vmem:[%s1050_s1 + $0x20] sm:$0xff] }
  0x13   :  { %182 = vmatprep.subr.mxu0 %v80_v21  ;;  %547 = vmatpush3.msra.mxu1 %v90_v33  ;;  %v123_v51 = vld [vmem:[%s1050_s1 + $0x220] sm:$0xff]  ;;  %v58_v52 = vld [vmem:[%s1050_s1 + $0x18] sm:$0xff]  ;;  %v56_v54 = vld [vmem:[%s1050_s1 + $0x8] sm:$0xff] }
  0x14   :  { %183 = vmatpush1.msra.mxu0 %v79_v23  ;;  %548 = vmatprep.subr.mxu1 %v135_v35  ;;  %v75_v53 = vld [vmem:[%s1050_s1 + $0xa0] sm:$0xff]  ;;  %v120_v55 = vld [vmem:[%s1050_s1 + $0x208] sm:$0xff]  ;;  %v149_v58 = vld [vmem:[%s1050_s1 + $0x2f0] sm:$0xff] }
  0x15   :  { %184 = vmatprep.subr.mxu0 %v77_v26  ;;  %549 = vmatpush3.msra.mxu1 %v87_v37  ;;  %v55_v56 = vld [vmem:[%s1050_s1] sm:$0xff]  ;;  %v72_v57 = vld [vmem:[%s1050_s1 + $0x88] sm:$0xff]  ;;  %v117_v59 = vld [vmem:[%s1050_s1 + $0x1f0] sm:$0xff] }
  0x16   :  { %185 = vmatpush1.msra.mxu0 %v76_v28  ;;  %550 = vmatprep.subr.mxu1 %v132_v39  ;;  %v148_v60 = vld [vmem:[%s1050_s1 + $0x2e8] sm:$0xff]  ;;  %v69_v61 = vld [vmem:[%s1050_s1 + $0x70] sm:$0xff] }
  0x17   :  { %186 = vmatprep.subr.mxu0 %v74_v30  ;;  %551 = vmatpush3.msra.mxu1 %v84_v41 }
  0x18   :  { %187 = vmatpush1.msra.mxu0 %v73_v32  ;;  %552 = vmatprep.subr.mxu1 %v129_v43 }
  0x19   :  { %188 = vmatprep.subr.mxu0 %v71_v34  ;;  %553 = vmatpush3.msra.mxu1 %v81_v45 }
  0x1a   :  { %189 = vmatpush1.msra.mxu0 %v70_v36  ;;  %554 = vmatprep.subr.mxu1 %v126_v47 }
  0x1b   :  { %190 = vmatprep.subr.mxu0 %v68_v38  ;;  %555 = vmatpush3.msra.mxu1 %v78_v49 }
  0x1c   :  { %191 = vmatpush1.msra.mxu0 %v67_v40  ;;  %556 = vmatprep.subr.mxu1 %v123_v51 }
  0x1d   :  { %192 = vmatprep.subr.mxu0 %v65_v42  ;;  %557 = vmatpush3.msra.mxu1 %v75_v53 }
  0x1e   :  { %193 = vmatpush1.msra.mxu0 %v64_v44  ;;  %558 = vmatprep.subr.mxu1 %v120_v55 }
  0x1f   :  { %194 = vmatprep.subr.mxu0 %v62_v46 }
  0x20   :  { %195 = vmatpush1.msra.mxu0 %v61_v48 }
  0x21   :  { %196 = vmatprep.subr.mxu0 %v59_v50 }
  0x22   :  { %197 = vmatpush1.msra.mxu0 %v58_v52 }
  0x23   :  { %198 = vmatprep.subr.mxu0 %v56_v54 }
  0x24   :  { %11 = vsyncpa [#allocation3], 0  ;;  %199 = vmatpush1.msra.mxu0 %v55_v56  ;;  %v146_v62 = vld [vmem:[%s1050_s1 + $0x2d8] sm:$0xff]  ;;  %559 = vmatpush3.msra.mxu1 %v72_v57  ;;  %v145_v1 = vld [vmem:[%s1050_s1 + $0x2d0] sm:$0xff]  ;;  %vm37_vm0 = vcmask 261120   ;;  %vm39_vm1 = vcmask 523264   ;;  %v153_v53 = vlaneseq }
  0x25   :  { %v114_v63 = vld [vmem:[%s1050_s1 + $0x1d8] sm:$0xff]  ;;  %200 = vmatprep.subr.mxu0 %v149_v58  ;;  %560 = vmatprep.subr.mxu1 %v117_v59  ;;  %v143_v3 = vld [vmem:[%s1050_s1 + $0x2c0] sm:$0xff]  ;;  %v140_v7 = vld [vmem:[%s1050_s1 + $0x2a8] sm:$0xff]  ;;  %vm41_vm2 = vcmask 785408   ;;  %vm331_vm4 = vcmask 64512   ;;  %vm389_vm5 = vcmask 7168  }
  0x26   :  { %v66_v2 = vld [vmem:[%s1050_s1 + $0x58] sm:$0xff]  ;;  %201 = vmatpush2.msra.mxu0 %v148_v60  ;;  %561 = vmatpush3.msra.mxu1 %v69_v61  ;;  %v111_v4 = vld [vmem:[%s1050_s1 + $0x1c0] sm:$0xff]  ;;  %v108_v8 = vld [vmem:[%s1050_s1 + $0x1a8] sm:$0xff]  ;;  %v154_v54 = vshrl.u32 %v153_v53, 7  ;;  %vm391_vm6 = vcmask 15360   ;;  %vm393_vm7 = vcmask 23552  }
  0x27   :  { %202 = vmatprep.subr.mxu0 %v146_v62  ;;  %v142_v5 = vld [vmem:[%s1050_s1 + $0x2b8] sm:$0xff]  ;;  %562 = vmatprep.subr.mxu1 %v114_v63  ;;  %v63_v6 = vld [vmem:[%s1050_s1 + $0x40] sm:$0xff]  ;;  %v60_v10 = vld [vmem:[%s1050_s1 + $0x28] sm:$0xff]  ;;  %vm395_vm8 = vcmask 31744   ;;  %vm397_vm9 = vcmask 39936   ;;  %vm399_vm10 = vcmask 48128  }
  0x28   :  { %203 = vmatpush2.msra.mxu0 %v145_v1  ;;  %563 = vmatpush3.msra.mxu1 %v66_v2  ;;  %v139_v9 = vld [vmem:[%s1050_s1 + $0x2a0] sm:$0xff]  ;;  %v137_v11 = vld [vmem:[%s1050_s1 + $0x290] sm:$0xff]  ;;  %v136_v13 = vld [vmem:[%s1050_s1 + $0x288] sm:$0xff]  ;;  %v155_v55 = vsub.s32 0, %v154_v54  ;;  %v159_v57 = vsub.s32 1, %v154_v54  ;;  %vm401_vm11 = vcmask 56320  }
  0x29   :  { %204 = vmatprep.subr.mxu0 %v143_v3  ;;  %564 = vmatprep.subr.mxu1 %v111_v4  ;;  %v105_v12 = vld [vmem:[%s1050_s1 + $0x190] sm:$0xff]  ;;  %v134_v15 = vld [vmem:[%s1050_s1 + $0x278] sm:$0xff]  ;;  %v131_v17 = vld [vmem:[%s1050_s1 + $0x260] sm:$0xff]  ;;  %s635_s19 = smov [#allocation2]  }
  0x2a   :  { %205 = vmatpush2.msra.mxu0 %v142_v5  ;;  %565 = vmatpush3.msra.mxu1 %v63_v6  ;;  %v57_v14 = vld [vmem:[%s1050_s1 + $0x10] sm:$0xff]  ;;  %v130_v18 = vld [vmem:[%s1050_s1 + $0x258] sm:$0xff]  ;;  %v128_v19 = vld [vmem:[%s1050_s1 + $0x248] sm:$0xff]  ;;  %v163_v5 = vsub.s32 2, %v154_v54  ;;  %s527_s20 = sshll.u32 %s635_s19, 4  ;;  %s528_s20 = int_to_ptr.vmem [resolvable:$true] %s527_s20 }
  0x2b   :  { %206 = vmatprep.subr.mxu0 %v140_v7  ;;  %566 = vmatprep.subr.mxu1 %v108_v8  ;;  %v133_v16 = vld [vmem:[%s1050_s1 + $0x270] sm:$0xff]  ;;  %v127_v20 = vld [vmem:[%s1050_s1 + $0x240] sm:$0xff]  ;;  %v124_v22 = vld [vmem:[%s1050_s1 + $0x228] sm:$0xff]  ;;  %p606_p1 = scmp.lt.s32.totalorder %s528_s20, %s528_s20 }
  0x2c   :  { %207 = vmatpush2.msra.mxu0 %v139_v9  ;;  %567 = vmatpush3.msra.mxu1 %v60_v10  ;;  %v125_v21 = vld [vmem:[%s1050_s1 + $0x230] sm:$0xff]  ;;  %v122_v23 = vld [vmem:[%s1050_s1 + $0x218] sm:$0xff]  ;;  %v119_v25 = vld [vmem:[%s1050_s1 + $0x200] sm:$0xff] }
  0x2d   :  { %208 = vmatprep.subr.mxu0 %v137_v11  ;;  %568 = vmatprep.subr.mxu1 %v105_v12  ;;  %v121_v24 = vld [vmem:[%s1050_s1 + $0x210] sm:$0xff]  ;;  %v118_v26 = vld [vmem:[%s1050_s1 + $0x1f8] sm:$0xff]  ;;  %v116_v27 = vld [vmem:[%s1050_s1 + $0x1e8] sm:$0xff] }
  0x2e   :  { %209 = vmatpush2.msra.mxu0 %v136_v13  ;;  %569 = vmatpush3.msra.mxu1 %v57_v14  ;;  %v115_v28 = vld [vmem:[%s1050_s1 + $0x1e0] sm:$0xff]  ;;  %v113_v29 = vld [vmem:[%s1050_s1 + $0x1d0] sm:$0xff]  ;;  %v112_v30 = vld [vmem:[%s1050_s1 + $0x1c8] sm:$0xff] }
  0x2f   :  { %210 = vmatprep.subr.mxu0 %v134_v15  ;;  %v110_v31 = vld [vmem:[%s1050_s1 + $0x1b8] sm:$0xff]  ;;  %v109_v32 = vld [vmem:[%s1050_s1 + $0x1b0] sm:$0xff]  ;;  %v107_v33 = vld [vmem:[%s1050_s1 + $0x1a0] sm:$0xff] }
  0x30   :  { %211 = vmatpush2.msra.mxu0 %v133_v16  ;;  %v106_v34 = vld [vmem:[%s1050_s1 + $0x198] sm:$0xff]  ;;  %v104_v35 = vld [vmem:[%s1050_s1 + $0x188] sm:$0xff]  ;;  %v103_v36 = vld [vmem:[%s1050_s1 + $0x180] sm:$0xff] }
  0x31   :  { %212 = vmatprep.subr.mxu0 %v131_v17  ;;  %v151_v56 = vld [vmem:[%s1051_s2] sm:$0x7]  ;;  %s626_s2 = smov 120  }
  0x32   :  { %213 = vmatpush2.msra.mxu0 %v130_v18  ;;  %v156_v58 = vrot.slane %v151_v56, %v155_v55  ;;  %v160_v59 = vrot.slane %v151_v56, %v159_v57  ;;  %v164_v8 = vrot.slane %v151_v56, %v163_v5  ;;  %v633_v5 = vmov 6  }
  0x33   :  { %214 = vmatprep.subr.mxu0 %v128_v19 }
  0x34   :  { %215 = vmatpush2.msra.mxu0 %v127_v20 }
  0x35   :  { %216 = vmatprep.subr.mxu0 %v125_v21 }
  0x36   :  { %217 = vmatpush2.msra.mxu0 %v124_v22 }
  0x37   :  { %218 = vmatprep.subr.mxu0 %v122_v23 }
  0x38   :  { %219 = vmatpush2.msra.mxu0 %v121_v24 }
  0x39   :  { %220 = vmatprep.subr.mxu0 %v119_v25 }
  0x3a   :  { %221 = vmatpush2.msra.mxu0 %v118_v26 }
  0x3b   :  { %222 = vmatprep.subr.mxu0 %v116_v27 }
  0x3c   :  { %223 = vmatpush2.msra.mxu0 %v115_v28 }
  0x3d   :  { %224 = vmatprep.subr.mxu0 %v113_v29 }
  0x3e   :  { %225 = vmatpush2.msra.mxu0 %v112_v30 }
  0x3f   :  { %226 = vmatprep.subr.mxu0 %v110_v31 }
  0x40   :  { %227 = vmatpush2.msra.mxu0 %v109_v32 }
  0x41   :  { %228 = vmatprep.subr.mxu0 %v107_v33 }
  0x42   :  { %229 = vmatpush2.msra.mxu0 %v106_v34 }
  0x43   :  { %230 = vmatprep.subr.mxu0 %v104_v35  ;;  %v627_v35 = vmov 2  }
  0x44   :  { %231 = vmatpush2.msra.mxu0 %v103_v36  ;;  %587 = vset.pattern.permute.xlu1 %v627_v35  ;;  %v628_v36 = vmov 1  }
  0x45   :  { %586 = vset.pattern.permute.xlu0 %v628_v36 }
  0x74   :  { %v982_v37 = vpop.permute.xlu1 %34  ;;  %v29_v38 = vpop.permute.xlu0 %28 }
  0x75   :  { %v38_v39 = vsel %vm37_vm0, %v674_v0, %v29_v38 }
  0x78   :  { %v46_v40 = vpop.permute.xlu1 %45  ;;  %v32_v41 = vpop.permute.xlu0 %31 }
  0x79   :  { %v40_v42 = vsel %vm39_vm1, %v38_v39, %v32_v41  ;;  %v49_v43 = vsel %vm39_vm1, %v32_v41, %v46_v40 }
  0x7a   :  { %v42_v46 = vsel %vm41_vm2, %v40_v42, %v982_v37 }
  0x7b   :  { %v53_v50 = vmul.f32 %v49_v43, %v42_v46 }
  0x7c   :  { %v317_v44 = vpop.permute.xlu1 %316  ;;  %v48_v45 = vpop.permute.xlu0 %47 }
  0x7d   :  { %v319_v47 = vmul.f32 %v317_v44, %v674_v0  ;;  %v50_v48 = vsel %vm39_vm1, %v46_v40, %v48_v45 }
  0x7e   :  { %v54_v49 = vmul.f32 %v50_v48, %v42_v46 }
  0x7f   :  { %321 = vrot.lane.b32.xlu0 %v319_v47, %s623_s23 }
  0x80   :  { %232 = vmatprep.mubr.f32.mxu0 %v54_v49  ;;  %303 = vmatprep.mubr.f32.mxu1 %v54_v49 }
  0x81   :  { %233 = vmatmul.mubr.f32.vlgmr.msra.gmra.mxu0 %v53_v50  ;;  %304 = vmatmul.mubr.f32.vlgmr.msra.gmra.mxu1 %v53_v50 }
  0xf1   :  { %v322_v51 = vpop.permute.xlu0 %321 }
  0xf2   :  { %v324_v52 = vsel %vm37_vm0, %v322_v51, 0.0 }
  0xf3   :  { %325 = vadd.xlane.f32.xlu1 %v324_v52 }
 0x141   :  { %v234_v60 = vpop.f32.mrf.mxu0  ;;  %v570_v3 = vpop.f32.mrf.mxu1 }
 0x142   :  { %v996_v61 = vadd.f32 %v234_v60, %v156_v58 }
 0x143   :  { %v236_v62 = vpop.f32.mrf.mxu0  ;;  %v571_v6 = vpop.f32.mrf.mxu1 }
 0x144   :  { %v998_v63 = vadd.f32 %v236_v62, %v160_v59  ;;  %v343_v1 = vmul.f32 %v996_v61, %v996_v61  ;;  %v572_v7 = vadd.f32 %v571_v6, %v570_v3  ;;  %v631_v3 = vmov 5  }
 0x145   :  { %v634_v6 = vmov 7  }
 0x146   :  { %348 = vrot.lane.b32.xlu0 %v343_v1, %s623_s23  ;;  %354 = vrot.lane.b32.xlu1 %v343_v1, %s625_s13  ;;  %v366_v2 = vmul.f32 %v998_v63, %v998_v63  ;;  %v344_v4 = vsel %vm37_vm0, %v343_v1, 0.0  ;;  %v306_v9 = vadd.f32 %v572_v7, %v164_v8 }
 0x148   :  { %v367_v15 = vsel %vm37_vm0, %v366_v2, 0.0  ;;  %v309_v31 = vmul.f32 0.03125, %v306_v9 }
 0x14a   :  { %371 = vrot.lane.b32.xlu0 %v366_v2, %s623_s23  ;;  %360 = vrot.lane.b32.xlu1 %v343_v1, %s624_s24  ;;  %v404_v34 = vmul.f32 %v309_v31, %v309_v31  ;;  %v629_v1 = vmov 3  }
 0x14e   :  { %377 = vrot.lane.b32.xlu1 %v366_v2, %s625_s13 }
 0x172   :  { %345 = vadd.xlane.f32.xlu1 %v344_v4  ;;  %v632_v4 = vmov 4  }
 0x17c   :  { %v326_v10 = vpop.xlane.xlu1 %325 }
 0x17d   :  { %v327_v11 = vadd.f32 %v326_v10, %v306_v9 }
 0x17f   :  { %v329_v12 = vmul.f32 0.01, %v327_v11  ;;  %vm328_vm3 = vcmp.ge.f32.partialorder %v327_v11, 0.0 }
 0x181   :  { %v330_v13 = vsel %vm328_vm3, %v327_v11, %v329_v12 }
 0x182   :  { %v332_v14 = vsel %vm331_vm4, %v330_v13, -inf }
 0x183   :  { %333 = vmax.xlane.f32.xlu0 %v332_v14 }
 0x199   :  { %383 = vrot.lane.b32.xlu0 %v366_v2, %s624_s24  ;;  %v630_v2 = vmov 0  }
 0x1b8   :  { %368 = vadd.xlane.f32.xlu0 %v367_v15  ;;  %v355_v16 = vpop.permute.xlu1 %354  ;;  %v349_v17 = vpop.permute.xlu0 %348 }
 0x1b9   :  { %v351_v18 = vsel %vm37_vm0, %v349_v17, 0.0  ;;  %v357_v22 = vsel %vm37_vm0, %v355_v16, 0.0 }
 0x1bc   :  { %v361_v19 = vpop.permute.xlu1 %360  ;;  %352 = vadd.xlane.f32.xlu0 %v351_v18  ;;  %v372_v21 = vpop.permute.xlu0 %371 }
 0x1bd   :  { %v363_v20 = vsel %vm37_vm0, %v361_v19, 0.0  ;;  %v374_v24 = vsel %vm37_vm0, %v372_v21, 0.0 }
 0x1be   :  { %364 = vadd.xlane.f32.xlu1 %v363_v20 }
 0x1c0   :  { %v378_v23 = vpop.permute.xlu1 %377  ;;  %358 = vadd.xlane.f32.xlu0 %v357_v22 }
 0x1c1   :  { %v380_v25 = vsel %vm37_vm0, %v378_v23, 0.0 }
 0x1c2   :  { %375 = vadd.xlane.f32.xlu1 %v374_v24 }
 0x1c4   :  { %381 = vadd.xlane.f32.xlu0 %v380_v25 }
 0x1fb   :  { %v346_v40 = vpop.xlane.xlu1 %345 }
 0x20c   :  { %v334_v26 = vpop.xlane.xlu0 %333 }
 0x20d   :  { %v335_v27 = vsub.f32 %v330_v13, %v334_v26 }
 0x20f   :  { %v336_v28 = vmul.f32 1.442695, %v335_v27 }
 0x210   :  { %v384_v29 = vpop.permute.xlu0 %383 }
 0x211   :  { %595 = vpow2.f32 %v336_v28  ;;  %v386_v30 = vsel %vm37_vm0, %v384_v29, 0.0 }
 0x212   :  { %387 = vadd.xlane.f32.xlu1 %v386_v30 }
 0x21e   :  { %v596_v32 = vpop.eup %595 }
 0x21f   :  { %v338_v33 = vsel %vm331_vm4, %v596_v32, 0.0 }
 0x220   :  { %339 = vadd.xlane.f32.xlu0 %v338_v33 }
 0x223   :  { %406 = vrot.lane.b32.xlu1 %v404_v34, %s626_s2 }
 0x227   :  { %414 = vrot.lane.b32.xlu1 %v309_v31, %s626_s2 }
 0x241   :  { %v369_v38 = vpop.xlane.xlu0 %368 }
 0x245   :  { %v353_v39 = vpop.xlane.xlu0 %352 }
 0x246   :  { %v390_v42 = vsel %vm389_vm5, %v346_v40, %v353_v39 }
 0x247   :  { %v365_v43 = vpop.xlane.xlu1 %364 }
 0x249   :  { %v359_v41 = vpop.xlane.xlu0 %358 }
 0x24a   :  { %v392_v44 = vsel %vm391_vm6, %v390_v42, %v359_v41  ;;  %v536_v41 = vld [vmem:[%s1053_s4] ss:$0 sm:$0xff]  ;;  %s601_s4 = scalar_lea.vmem %s528_s20, 128 }
 0x24b   :  { %v394_v45 = vsel %vm393_vm7, %v392_v44, %v365_v43  ;;  %v376_v46 = vpop.xlane.xlu1 %375  ;;  %v537_v42 = vld [vmem:[%s1054_s5] ss:$0 sm:$0xff]  ;;  %v510_v44 = vmul.f32 %v982_v37, %v674_v0  ;;  %p602_p0 = scmp.ne.s32.totalorder %s528_s20, %s601_s4  ;;  %p607_p2 = scmp.lt.s32.totalorder %s601_s4, %s601_s4 }
 0x24c   :  { %v396_v47 = vsel %vm395_vm8, %v394_v45, %v369_v38 }
 0x24d   :  { %v398_v48 = vsel %vm397_vm9, %v396_v47, %v376_v46  ;;  %v382_v49 = vpop.xlane.xlu0 %381  ;;  %p608_p3 = por %p607_p2, %p606_p1 }
 0x24e   :  { %v400_v51 = vsel %vm399_vm10, %v398_v48, %v382_v49 }
 0x24f   :  { %p609_p4 = pnand %p608_p3, %p602_p0 }
 0x29b   :  { %v388_v50 = vpop.xlane.xlu1 %387 }
 0x29c   :  { %v402_v52 = vsel %vm401_vm11, %v400_v51, %v388_v50 }
 0x29d   :  { %v403_v53 = vmul.f32 0.03125, %v402_v52 }
 0x29f   :  { %v407_v54 = vpop.permute.xlu1 %406 }
 0x2a0   :  { %v409_v55 = vsub.f32 %v403_v53, %v407_v54 }
 0x2a2   :  { %v410_v56 = vadd.f32 1e-05, %v409_v55 }
 0x2a3   :  { %v415_v7 = vpop.permute.xlu1 %414 }
 0x2a9   :  { %v340_v57 = vpop.xlane.xlu0 %339 }
 0x2aa   :  { %597 = vrcp.f32 %v340_v57 }
 0x2ab   :  { %599 = vrsqrt.f32 %v410_v56 }
 0x2b7   :  { %v598_v58 = vpop.eup %597 }
 0x2b8   :  { %v342_v59 = vmul.f32 %v598_v58, %v596_v32  ;;  %v600_v60 = vpop.eup %599 }
 0x2ba   :  { %v412_v62 = vmul.f32 %v600_v60, %v342_v59 }
 0x2bc   :  { %438 = vperm.xlu1 %587, %v412_v62   ;;  %428 = vperm.xlu0 %586, %v412_v62   ;;  %v417_v8 = vmul.f32 %v415_v7, %v412_v62 }
 0x2be   :  { %v418_v9 = vsel %vm331_vm4, %v417_v8, 0.0 }
 0x2c0   :  { %588 = vset.pattern.permute.xlu1 %v629_v1  ;;  %592 = vset.pattern.permute.xlu0 %v630_v2 }
 0x2c1   :  { %448 = vperm.xlu1 %588, %v412_v62   ;;  %423 = vperm.xlu0 %592, %v412_v62  }
 0x2c5   :  { %589 = vset.pattern.permute.xlu1 %v631_v3  ;;  %593 = vset.pattern.permute.xlu0 %v632_v4 }
 0x2c6   :  { %464 = vperm.xlu1 %589, %v412_v62   ;;  %458 = vperm.xlu0 %593, %v412_v62  }
 0x2ca   :  { %590 = vset.pattern.permute.xlu1 %v633_v5  ;;  %594 = vset.pattern.permute.xlu0 %v634_v6 }
 0x2cb   :  { %474 = vperm.xlu1 %590, %v412_v62  }
 0x2cf   :  { %591 = vset.pattern.permute.xlu1 %v634_v6 }
 0x2d0   :  { %484 = vperm.xlu1 %591, %v412_v62  }
 0x2f4   :  { %419 = vadd.xlane.f32.xlu1 %v418_v9 }
 0x337   :  { %v439_v10 = vpop.permute.xlu1 %438  ;;  %v429_v11 = vpop.permute.xlu0 %428 }
 0x338   :  { %v431_v12 = vmul.f32 %v429_v11, %v996_v61  ;;  %v441_v13 = vmul.f32 %v439_v10, %v996_v61 }
 0x33a   :  { %433 = vrot.lane.b32.xlu0 %v431_v12, %s623_s23 }
 0x33c   :  { %v449_v14 = vpop.permute.xlu1 %448  ;;  %v424_v22 = vpop.permute.xlu0 %423 }
 0x33d   :  { %v451_v15 = vmul.f32 %v449_v14, %v996_v61  ;;  %v426_v25 = vmul.f32 %v424_v22, %v996_v61 }
 0x33e   :  { %443 = vrot.lane.b32.xlu0 %v441_v13, %s625_s13 }
 0x341   :  { %v465_v16 = vpop.permute.xlu1 %464  ;;  %v459_v23 = vpop.permute.xlu0 %458 }
 0x342   :  { %453 = vrot.lane.b32.xlu0 %v451_v15, %s624_s24  ;;  %v467_v17 = vmul.f32 %v465_v16, %v998_v63  ;;  %v461_v30 = vmul.f32 %v459_v23, %v998_v63 }
 0x346   :  { %v475_v18 = vpop.permute.xlu1 %474  ;;  %469 = vrot.lane.b32.xlu0 %v467_v17, %s623_s23 }
 0x347   :  { %v477_v19 = vmul.f32 %v475_v18, %v998_v63 }
 0x349   :  { %479 = vrot.lane.b32.xlu1 %v477_v19, %s625_s13 }
 0x34b   :  { %v485_v20 = vpop.permute.xlu1 %484 }
 0x34c   :  { %v487_v21 = vmul.f32 %v485_v20, %v998_v63 }
 0x34e   :  { %489 = vrot.lane.b32.xlu0 %v487_v21, %s624_s24 }
 0x37d   :  { %v420_v33 = vpop.xlane.xlu1 %419 }
 0x3ac   :  { %v434_v24 = vpop.permute.xlu0 %433 }
 0x3ad   :  { %v436_v27 = vadd.f32 %v434_v24, %v426_v25 }
 0x3b0   :  { %v444_v26 = vpop.permute.xlu0 %443 }
 0x3b1   :  { %v446_v28 = vadd.f32 %v444_v26, %v436_v27 }
 0x3b4   :  { %v454_v29 = vpop.permute.xlu0 %453 }
 0x3b5   :  { %v456_v31 = vadd.f32 %v454_v29, %v446_v28 }
 0x3b7   :  { %v462_v32 = vadd.f32 %v461_v30, %v456_v31 }
 0x3b8   :  { %v470_v34 = vpop.permute.xlu0 %469 }
 0x3b9   :  { %v472_v35 = vadd.f32 %v470_v34, %v462_v32 }
 0x3bb   :  { %v480_v36 = vpop.permute.xlu1 %479 }
 0x3bc   :  { %v482_v38 = vadd.f32 %v480_v36, %v472_v35 }
 0x3c0   :  { %v490_v39 = vpop.permute.xlu0 %489 }
 0x3c1   :  { %v492_v40 = vadd.f32 %v490_v39, %v482_v38 }
 0x3c3   :  { %v493_v61 = vsub.f32 %v492_v40, %v420_v33 }
 0x3c5   :  { %v501_v43 = vmul.f32 %v536_v41, %v493_v61 }
 0x3c7   :  { %v509_v63 = vadd.f32 %v537_v42, %v501_v43 }
 0x3c9   :  { %512 = vrot.lane.b32.xlu0 %v509_v63, %s624_s24 }
 0x43b   :  { %v513_v45 = vpop.permute.xlu0 %512 }
 0x43c   :  { %v515_v46 = vsel %vm37_vm0, %v510_v44, %v513_v45 }
 0x43d   :  { %vm516_vm12 = vcmp.ge.f32.partialorder %v515_v46, 0.0  ;;  %v517_v47 = vmul.f32 0.01, %v515_v46 }
 0x43f   :  { %v518_v48 = vsel %vm516_vm12, %v515_v46, %v517_v47 }
 0x440   :  { %v519_v49 = vsel %vm39_vm1, %v518_v48, 0.0 }
 0x441   :  { %520 = vst [vmem:[#allocation2] sm:$0xff] %v519_v49 }
 0x442   :  { %612 = shalt.err (!%p609_p4)
}
 0x443   :  { %530 = dma.vmem_to_hbm [thread:$0]  %s528_s20, 128, %s1055_s6, [#allocation3]  }
 0x444   :  { %621 = dma.done.wait [#allocation3], 128  }
 0x445   :  { %622 = vsyncadd [#allocation3], 4294967168 }
 0x446   :  { %534 = vsyncpa [#allocation3], 1 }

</bundles_post_ra>
